<compile_context>
chip_gen: v5e
topology: v5e:2x2
jax: 0.10.0
libtpu: 0.0.40
codegen_flags: <defaults>
</compile_context>

<pallas_src>
import jax
import jax.numpy as jnp
from jax.experimental import pallas as pl
from jax.experimental.pallas import tpu as pltpu


def self_attn_kernel(xo_ref, wall_ref, wa_ref, sig_ref, o_ref):
    # xo_ref  : (1, HW, C)          f32   rows permuted into 2x2-pool offset-major
    #                                     order: rows [k*HW/4, (k+1)*HW/4) hold
    #                                     spatial offset k of every pool window
    #                                     (pooled positions row-major inside).
    # wall_ref: (C, C/8 + C/8 + C/2) bf16  fused [theta || phi || g] 1x1-conv weights
    # wa_ref  : (C/2, C)             bf16  attn 1x1-conv weights
    # sig_ref : (1,)                 f32, SMEM scalar
    # o_ref   : (1, HW, C)           f32   output rows in the same offset-major order
    HW = xo_ref.shape[1]
    HW4 = HW // 4
    C2 = wa_ref.shape[0]
    C8 = (wall_ref.shape[1] - C2) // 2

    x = xo_ref[0]                                                     # (HW, C) f32
    x16 = x.astype(jnp.bfloat16)

    # One fused MXU push: [theta || phi || g] for every row (bf16 in, f32 acc).
    tpg = jnp.dot(x16, wall_ref[...], preferred_element_type=jnp.float32)  # (HW, C/8+C/8+C/2)

    theta = tpg[:, :C8].astype(jnp.bfloat16)                          # (HW, C/8), all rows

    # Fused 2x2 maxpool of phi||g: elementwise max over the four offset blocks
    # (sublane-aligned static slices -> pure VPU work).
    pg = tpg[:, C8:]                                                  # (HW, C/8 + C/2)
    pg = jnp.maximum(jnp.maximum(pg[0 * HW4:1 * HW4], pg[1 * HW4:2 * HW4]),
                     jnp.maximum(pg[2 * HW4:3 * HW4], pg[3 * HW4:4 * HW4]))  # (HW/4, .)
    phi_p16 = pg[:, :C8].astype(jnp.bfloat16)                         # (HW/4, C/8)
    g_p16 = pg[:, C8:].astype(jnp.bfloat16)                           # (HW/4, C/2)

    # logits = theta @ phi_p^T: contract the channel dim directly (no transpose),
    # bf16 operands at native MXU rate, f32 accumulation; the max-subtraction
    # below protects softmax numerics.
    logits = jax.lax.dot_general(
        theta, phi_p16, dimension_numbers=(((1,), (1,)), ((), ())),
        preferred_element_type=jnp.float32)                           # (HW, HW/4)

    # Softmax over the pooled axis: unnormalized exp, rowsum in f32, reciprocal
    # on the EUP; the 1/rowsum is folded into attn_g (touches (HW, C/2) only).
    m = jnp.max(logits, axis=-1, keepdims=True)
    e = jnp.exp(logits - m)                                           # (HW, HW/4) f32
    inv = pl.reciprocal(jnp.sum(e, axis=-1, keepdims=True), approx=True)
    e16 = e.astype(jnp.bfloat16)

    # attn_g = softmax(logits) @ g_p == (e @ g_p) * (1/rowsum), bf16 MXU operands.
    attn_g = jnp.dot(e16, g_p16, preferred_element_type=jnp.float32) * inv  # (HW, C/2)

    # y = conv1x1_attn(attn_g): (HW, C)
    y = jnp.dot(attn_g.astype(jnp.bfloat16), wa_ref[...],
                preferred_element_type=jnp.float32)

    # out = x + sigma * y   (residual add in f32; exact reproduction at sigma=0)
    o_ref[0] = x + sig_ref[0] * y


def _vmem_limit_bytes():
    # Generation-aware VMEM cap: ~62% of physical VMEM leaves double-buffering
    # headroom (v5e/v6e: 128 MiB -> 80 MiB, v7x: 64 MiB -> 40 MiB).
    try:
        cap = int(pltpu.get_tpu_info().vmem_capacity_bytes)
    except Exception:  # unknown chip / older API: be conservative
        cap = 64 * 1024 * 1024
    return max(32 * 1024 * 1024, min(96 * 1024 * 1024, (cap * 5) // 8))


def self_attn_forward(x_nchw, wt, wp, wg, wa, sigma):
    """x_nchw: (B, C, H, W) float32 -> (B, C, H, W) float32."""
    B, C, H, W = x_nchw.shape
    assert H % 2 == 0 and W % 2 == 0, "fused 2x2 maxpool requires even H and W"
    assert C % 8 == 0, "in_channels must be divisible by 8"
    HW = H * W
    HW4 = HW // 4
    # Pool blocks must be sublane-aligned so the in-kernel slices stay relayout-free.
    assert HW4 % 8 == 0, "H*W/4 must be a multiple of 8"
    C8, C2 = C // 8, C // 2
    Ctot = C8 + C8 + C2

    # NCHW -> offset-major flattened NHWC in a single transpose (the 2x2-pool
    # offset grouping is folded into the unavoidable layout conversion, so x is
    # read/written exactly once before the kernel and shipped exactly once).
    # Row index = (2*dh + dw) * HW/4 + hp * W/2 + wp   with (h, w) = (2hp+dh, 2wp+dw).
    x_off = (
        x_nchw.reshape(B, C, H // 2, 2, W // 2, 2)
        .transpose(0, 3, 5, 2, 4, 1)                                  # (B, dh, dw, H/2, W/2, C)
        .reshape(B, HW, C)
        .astype(jnp.float32)
    )

    # Fused [theta || phi || g] weight: one MXU push per batch for all three 1x1 convs.
    w_all = jnp.concatenate([wt, wp, wg], axis=1).astype(jnp.bfloat16)  # (C, Ctot)
    wa_b = wa.astype(jnp.bfloat16)                                      # (C/2, C)
    sig = jnp.reshape(sigma, (1,)).astype(jnp.float32)

    out_off = pl.pallas_call(
        self_attn_kernel,
        out_shape=jax.ShapeDtypeStruct((B, HW, C), jnp.float32),
        grid_spec=pltpu.PrefetchScalarGridSpec(
            num_scalar_prefetch=0,
            grid=(B,),
            in_specs=[
                pl.BlockSpec((1, HW, C), lambda b: (b, 0, 0)),
                pl.BlockSpec((C, Ctot), lambda b: (0, 0)),
                pl.BlockSpec((C2, C), lambda b: (0, 0)),
                pl.BlockSpec(memory_space=pltpu.MemorySpace.SMEM),    # sigma scalar
            ],
            out_specs=pl.BlockSpec((1, HW, C), lambda b: (b, 0, 0)),
        ),
        compiler_params=pltpu.CompilerParams(
            # Batch elements are fully independent.  (On v7x, once the q-tiled
            # path lands, the tile axis should be pltpu.CORE_PARALLEL.)
            dimension_semantics=("parallel",),
            vmem_limit_bytes=_vmem_limit_bytes(),
        ),
    )(x_off, w_all, wa_b, sig)

    # Un-permute rows and return to NCHW, again in a single transpose.
    out = (
        out_off.reshape(B, 2, 2, H // 2, W // 2, C)                   # (B, dh, dw, hp, wp, C)
        .transpose(0, 5, 3, 1, 4, 2)                                  # (B, C, hp, dh, wp, dw)
        .reshape(B, C, H, W)
    )
    return out


def self_attn_reference(x_nchw, wt, wp, wg, wa, sigma):
    """Pure-JAX f32 reference mirroring the PyTorch forward (NCHW semantics)."""
    B, C, H, W = x_nchw.shape
    HW = H * W
    hp = jax.lax.Precision.HIGHEST
    x_nhwc = jnp.transpose(x_nchw, (0, 2, 3, 1))
    xf = x_nhwc.reshape(B, HW, C)

    theta = jnp.einsum("bnc,cd->bnd", xf, wt, precision=hp)           # (B, HW, C/8)
    phi = jnp.einsum("bnc,cd->bnd", xf, wp, precision=hp).reshape(B, H, W, -1)
    g = jnp.einsum("bnc,cd->bnd", xf, wg, precision=hp).reshape(B, H, W, -1)

    def pool2x2(t):
        Bc, Hh, Ww, Cc = t.shape
        return jnp.max(
            t.reshape(Bc, Hh // 2, 2, Ww // 2, 2, Cc), axis=(2, 4)
        ).reshape(Bc, (Hh // 2) * (Ww // 2), Cc)

    phi_p = pool2x2(phi)                                              # (B, HW/4, C/8)
    g_p = pool2x2(g)                                                  # (B, HW/4, C/2)

    logits = jnp.einsum("bnc,bmc->bnm", theta, phi_p, precision=hp)   # (B, HW, HW/4)
    attn = jax.nn.softmax(logits, axis=-1)
    attn_g = jnp.einsum("bnm,bmc->bnc", attn, g_p, precision=hp)      # (B, HW, C/2)
    y = jnp.einsum("bnc,cd->bnd", attn_g, wa, precision=hp)           # (B, HW, C)
    out_flat = xf + sigma * y
    return jnp.transpose(out_flat.reshape(B, H, W, C), (0, 3, 1, 2))


if __name__ == "__main__":
    B, C, H, W = 2, 64, 8, 8        # in_channels=64 -> C//8=8, C//2=32
    key = jax.random.PRNGKey(0)
    kx, kt, kp, kg, ka = jax.random.split(key, 5)

    x = jax.random.normal(kx, (B, C, H, W), dtype=jnp.float32)
    # 1x1 conv weights, stored as (C_in, C_out) (PyTorch (out,in,1,1) transposed)
    wt = 0.1 * jax.random.normal(kt, (C, C // 8), dtype=jnp.float32)
    wp = 0.1 * jax.random.normal(kp, (C, C // 8), dtype=jnp.float32)
    wg = 0.1 * jax.random.normal(kg, (C, C // 2), dtype=jnp.float32)
    wa = 0.1 * jax.random.normal(ka, (C // 2, C), dtype=jnp.float32)

    # Module init: self.sigma = nn.Parameter(torch.zeros(1)) -> out == x exactly
    # (x stays f32 end-to-end in the residual path).
    sigma_init = jnp.zeros((1,), dtype=jnp.float32)
    out_init = jax.block_until_ready(self_attn_forward(x, wt, wp, wg, wa, sigma_init))

    # Exercise the attention path with a nonzero sigma and verify vs. f32 reference
    # (tolerance accounts for bf16 matmul operands + approx reciprocal in softmax).
    sigma_test = jnp.array([0.7], dtype=jnp.float32)
    out = jax.block_until_ready(self_attn_forward(x, wt, wp, wg, wa, sigma_test))
    ref = jax.block_until_ready(self_attn_reference(x, wt, wp, wg, wa, sigma_test))

    assert out.shape == (B, C, H, W)
    assert jnp.allclose(out_init, x, atol=1e-5)          # sigma=0 -> out == x
    assert jnp.allclose(out, ref, atol=2e-2, rtol=2e-2)  # full attention path

    print("KERNEL_OK")
</pallas_src>

<mosaic_0001>
module attributes {stable_mosaic.version = 11 : i64} {
  func.func @self_attn_kernel(%arg0: i32, %arg1: memref<1x64x64xf32, #tpu.memory_space<vmem>>, %arg2: memref<64x48xbf16, #tpu.memory_space<vmem>>, %arg3: memref<32x64xbf16, #tpu.memory_space<vmem>>, %arg4: memref<1xf32, #tpu.memory_space<smem>>, %arg5: memref<1x64x64xf32, #tpu.memory_space<vmem>>) attributes {dimension_semantics = [#tpu.dimension_semantics<parallel>], iteration_bounds = array<i64: 2>, scalar_prefetch = 0 : i64, scratch_operands = 0 : i64, tpu.core_type = #tpu.core_type<tc>, window_params = [{transform_indices = @transform_0, window_bounds = array<i64: 1, 64, 64>}, {pipeline_mode = #tpu.pipeline_mode<synchronous>, transform_indices = @transform_1, window_bounds = array<i64: 64, 48>}, {pipeline_mode = #tpu.pipeline_mode<synchronous>, transform_indices = @transform_2, window_bounds = array<i64: 32, 64>}, {transform_indices = @transform_3, window_bounds = array<i64: 1>}, {transform_indices = @transform_4, window_bounds = array<i64: 1, 64, 64>}]} {
    %c0 = arith.constant 0 : index
    %c0_0 = arith.constant 0 : index
    %c0_1 = arith.constant 0 : index
    %0 = vector.load %arg1[%c0, %c0_0, %c0_1] : memref<1x64x64xf32, #tpu.memory_space<vmem>>, vector<1x64x64xf32>
    %1 = vector.shape_cast %0 : vector<1x64x64xf32> to vector<64x64xf32>
    %2 = arith.truncf %1 : vector<64x64xf32> to vector<64x64xbf16>
    %c0_2 = arith.constant 0 : index
    %c0_3 = arith.constant 0 : index
    %3 = vector.load %arg2[%c0_2, %c0_3] : memref<64x48xbf16, #tpu.memory_space<vmem>>, vector<64x48xbf16>
    %cst = arith.constant dense<0.000000e+00> : vector<64x48xf32>
    %4 = tpu.matmul %2, %3, %cst {dimension_numbers = #tpu.dot_dimension_numbers<[1], [0], [0], [1], [0, 0, 1, 1], [], []>} : vector<64x64xbf16>, vector<64x48xbf16>, vector<64x48xf32> -> vector<64x48xf32>
    %5 = vector.extract_strided_slice %4 {offsets = [0, 0], sizes = [64, 8], strides = [1, 1]} : vector<64x48xf32> to vector<64x8xf32>
    %6 = arith.truncf %5 : vector<64x8xf32> to vector<64x8xbf16>
    %7 = vector.extract_strided_slice %4 {offsets = [0, 8], sizes = [64, 40], strides = [1, 1]} : vector<64x48xf32> to vector<64x40xf32>
    %8 = vector.extract_strided_slice %7 {offsets = [0, 0], sizes = [16, 40], strides = [1, 1]} : vector<64x40xf32> to vector<16x40xf32>
    %9 = vector.extract_strided_slice %7 {offsets = [16, 0], sizes = [16, 40], strides = [1, 1]} : vector<64x40xf32> to vector<16x40xf32>
    %10 = arith.maximumf %8, %9 : vector<16x40xf32>
    %11 = vector.extract_strided_slice %7 {offsets = [32, 0], sizes = [16, 40], strides = [1, 1]} : vector<64x40xf32> to vector<16x40xf32>
    %12 = vector.extract_strided_slice %7 {offsets = [48, 0], sizes = [16, 40], strides = [1, 1]} : vector<64x40xf32> to vector<16x40xf32>
    %13 = arith.maximumf %11, %12 : vector<16x40xf32>
    %14 = arith.maximumf %10, %13 : vector<16x40xf32>
    %15 = vector.extract_strided_slice %14 {offsets = [0, 0], sizes = [16, 8], strides = [1, 1]} : vector<16x40xf32> to vector<16x8xf32>
    %16 = arith.truncf %15 : vector<16x8xf32> to vector<16x8xbf16>
    %17 = vector.extract_strided_slice %14 {offsets = [0, 8], sizes = [16, 32], strides = [1, 1]} : vector<16x40xf32> to vector<16x32xf32>
    %18 = arith.truncf %17 : vector<16x32xf32> to vector<16x32xbf16>
    %cst_4 = arith.constant dense<0.000000e+00> : vector<64x16xf32>
    %19 = tpu.matmul %6, %16, %cst_4 {dimension_numbers = #tpu.dot_dimension_numbers<[1], [1], [0], [0], [0, 0, 1, 0], [], []>} : vector<64x8xbf16>, vector<16x8xbf16>, vector<64x16xf32> -> vector<64x16xf32>
    %cst_5 = arith.constant dense<0xFF800000> : vector<64xf32>
    %20 = vector.multi_reduction <maximumf>, %19, %cst_5 [1] : vector<64x16xf32> to vector<64xf32>
    %21 = vector.shape_cast %20 : vector<64xf32> to vector<64x1xf32>
    %22 = vector.broadcast %21 : vector<64x1xf32> to vector<64x16xf32>
    %23 = arith.subf %19, %22 : vector<64x16xf32>
    %24 = math.exp %23 : vector<64x16xf32>
    %cst_6 = arith.constant dense<0.000000e+00> : vector<64xf32>
    %25 = vector.multi_reduction <add>, %24, %cst_6 [1] : vector<64x16xf32> to vector<64xf32>
    %26 = vector.shape_cast %25 : vector<64xf32> to vector<64x1xf32>
    %27 = tpu.reciprocal %26 {approx = true} : vector<64x1xf32> -> vector<64x1xf32>
    %28 = arith.truncf %24 : vector<64x16xf32> to vector<64x16xbf16>
    %cst_7 = arith.constant dense<0.000000e+00> : vector<64x32xf32>
    %29 = tpu.matmul %28, %18, %cst_7 {dimension_numbers = #tpu.dot_dimension_numbers<[1], [0], [0], [1], [0, 0, 1, 1], [], []>} : vector<64x16xbf16>, vector<16x32xbf16>, vector<64x32xf32> -> vector<64x32xf32>
    %30 = vector.broadcast %27 : vector<64x1xf32> to vector<64x32xf32>
    %31 = arith.mulf %29, %30 : vector<64x32xf32>
    %32 = arith.truncf %31 : vector<64x32xf32> to vector<64x32xbf16>
    %c0_8 = arith.constant 0 : index
    %c0_9 = arith.constant 0 : index
    %33 = vector.load %arg3[%c0_8, %c0_9] : memref<32x64xbf16, #tpu.memory_space<vmem>>, vector<32x64xbf16>
    %cst_10 = arith.constant dense<0.000000e+00> : vector<64x64xf32>
    %34 = tpu.matmul %32, %33, %cst_10 {dimension_numbers = #tpu.dot_dimension_numbers<[1], [0], [0], [1], [0, 0, 1, 1], [], []>} : vector<64x32xbf16>, vector<32x64xbf16>, vector<64x64xf32> -> vector<64x64xf32>
    %c0_11 = arith.constant 0 : index
    %35 = memref.load %arg4[%c0_11] : memref<1xf32, #tpu.memory_space<smem>>
    %36 = vector.broadcast %35 : f32 to vector<64x64xf32>
    %37 = arith.mulf %36, %34 : vector<64x64xf32>
    %38 = arith.addf %1, %37 : vector<64x64xf32>
    %c0_12 = arith.constant 0 : index
    %c0_13 = arith.constant 0 : index
    %c0_14 = arith.constant 0 : index
    %39 = vector.load %arg5[%c0_12, %c0_13, %c0_14] : memref<1x64x64xf32, #tpu.memory_space<vmem>>, vector<1x64x64xf32>
    %40 = vector.shape_cast %39 : vector<1x64x64xf32> to vector<64x64xf32>
    %41 = vector.shape_cast %38 : vector<64x64xf32> to vector<1x64x64xf32>
    tpu.vector_store %arg5[%c0_12, %c0_13, %c0_14], %41 {strides = array<i32>} : memref<1x64x64xf32, #tpu.memory_space<vmem>>, vector<1x64x64xf32>,
    return
  }
  func.func @transform_0(%arg0: i32) -> (i32, i32, i32) {
    %c0_i32 = arith.constant 0 : i32
    %c0_i32_0 = arith.constant 0 : i32
    %c0_i32_1 = arith.constant 0 : i32
    return %arg0, %c0_i32, %c0_i32_0 : i32, i32, i32
  }
  func.func @transform_1(%arg0: i32) -> (i32, i32) {
    %c0_i32 = arith.constant 0 : i32
    %c0_i32_0 = arith.constant 0 : i32
    %c0_i32_1 = arith.constant 0 : i32
    return %c0_i32, %c0_i32_0 : i32, i32
  }
  func.func @transform_2(%arg0: i32) -> (i32, i32) {
    %c0_i32 = arith.constant 0 : i32
    %c0_i32_0 = arith.constant 0 : i32
    %c0_i32_1 = arith.constant 0 : i32
    return %c0_i32, %c0_i32_0 : i32, i32
  }
  func.func @transform_3(%arg0: i32) -> i32 {
    %c0_i32 = arith.constant 0 : i32
    %c0_i32_0 = arith.constant 0 : i32
    return %c0_i32 : i32
  }
  func.func @transform_4(%arg0: i32) -> (i32, i32, i32) {
    %c0_i32 = arith.constant 0 : i32
    %c0_i32_0 = arith.constant 0 : i32
    %c0_i32_1 = arith.constant 0 : i32
    return %arg0, %c0_i32, %c0_i32_0 : i32, i32, i32
  }
}

</mosaic_0001>

<bundles_post_ra>
// kernel: tpu_custom_call.1
= control target key start
LH: loop header
LB: loop body
LE: loop exit
PB: predicated region body
PF: predicated region fallthrough
CT: control target
= control target key end

     0   :  { %s1185_s0 = inlined_call_operand.hbm [shape: f32[2,64,64], index: 0, kind: input, shape index: {}]   ;;  %s1186_s1 = inlined_call_operand.vmem [shape: bf16[64,48], index: 1, kind: input, shape index: {}]   ;;  %s1187_s2 = inlined_call_operand.vmem [shape: bf16[32,64], index: 2, kind: input, shape index: {}]   ;;  %s1188_s3 = inlined_call_operand.<no memory space> [shape: f32[1], index: 3, kind: input, shape index: {}]   ;;  %s1189_s4 = inlined_call_operand.hbm [shape: f32[2,64,64], index: 4, kind: output, shape index: {}]  }
   0x1   :  { %9 = sst [smem:[#allocation2]] %s1188_s3 }
   0x2   :  { %10 = vsyncpa [#allocation4], 0 }
   0x3   :  { %12 = vsyncpa [#allocation4 + $0x1], 0 }
   0x4   :  { %13 = vsyncpa [#allocation5], 0 }
   0x5   :  { %15 = vsyncpa [#allocation5 + $0x1], 0  ;;  %s957_s17 = smov 0   ;;  %s959_s18 = smov 0  }
   0x6   :  { %s961_s19 = smov 0   ;;  %s963_s20 = smov 0  }
   0x7 LB: > { %s978_s3 = sadd.s32 4294967295, %s921_s20   ;;  %s679_s21 = sadd.s32 4294967294, %s921_s20   ;;  %s921_s20 = sphi %s963_s20, %s1199_s20   ;;  %s917_s19 = sphi %s961_s19, %s1198_s19   ;;  %s913_s18 = sphi %s959_s18, %s1197_s18   ;;  %s909_s17 = sphi %s957_s17, %s1196_s17  }
   0x8   : > { %s982_s22 = sadd.s32 1, %s921_s20   ;;  %s28_s23 = sadd.s32 1, %s917_s19 }
   0x9   : > { %s25_s24 = ssub.s32 %s921_s20, %s982_s22  ;;  %p35_p0 = scmp.ne.s32.totalorder %s917_s19, %s913_s18 }
   0xa   : > { %p26_p1 = scmp.eq.s32.totalorder %s25_s24, 0  ;;  %p36_p2 = scmp.eq.s32.totalorder %s921_s20, 0 }
   0xb   : > { %p41_p3 = scmp.ne.s32.totalorder %s913_s18, %s909_s17  ;;  %p42_p4 = scmp.eq.s32.totalorder %s978_s3, 0 }
   0xc   : > { %s994_s25 = scalar_select %p26_p1, %s917_s19, %s28_s23  }
   0xd   : > { %p996_p5 = por %p36_p2, %p35_p0  ;;  %p1000_p6 = por %p42_p4, %p41_p3 }
   0xe   : > { %p128_p7 = scmp.eq.s32.totalorder %s978_s3, 1  ;;  %p134_p8 = scmp.eq.s32.totalorder %s679_s21, 1 }
   0xf   : > { %p753_p10 = scmp.lt.s32.totalorder %s921_s20, 2  ;;  %s163_s30 = sand.u32 1, %s917_s19  }
  0x10   : > { %p1007_p11 = por %p128_p7, %p35_p0  ;;  %p1011_p12 = por %p134_p8, %p41_p3 }
  0x11   : > { %s733_s5 = sshll.u32 %s921_s20, 6  ;;  %s682_s6 = sshll.u32 %s163_s30, 6 }
  0x12   : > { %s172_s9 = scalar_lea.hbm %s1185_s0, %s733_s5  ;;  %s167_s11 = scalar_lea.vmem [#allocation3], %s682_s6 }
  0x13   : > { %s173_s10 = sshll.u32 %s172_s9, 4  ;;  %s175_s12 = sshll.u32 %s167_s11, 4  ;;  %s174_s10 = int_to_ptr.hbm [resolvable:$true] %s173_s10  ;;  %s176_s12 = int_to_ptr.vmem [resolvable:$true] %s175_s12 }
  0x14   : > { %p1022_p13 = pnand %p753_p10, %p996_p5  ;;  %p685_p0 = scmp.ge.s32.totalorder %s921_s20, 1 }
  0x15   : > { %p183_p1 = scmp.lt.s32.totalorder %s921_s20, 3  ;;  %s164_s14 = scalar_lea.sflag [#allocation4], %s163_s30 }
  0x16   : > { %s825_s15 = sshra.s32 %s174_s10, 4  ;;  %p829_p3 = pneg %p1022_p13  ;;  %s826_s15 = int_to_ptr.hbm [resolvable:$true] %s825_s15 }
  0x17   : > { %s827_s16 = scalar_lea.hbm %s826_s15, 64  ;;  %s832_s24 = scalar_lea.hbm %s1185_s0, 128 }
  0x18   : > { %p828_p2 = scmp.ne.s32.totalorder %s826_s15, %s827_s16  ;;  %p833_p5 = scmp.lt.s32.totalorder %s826_s15, %s1185_s0 }
  0x19   : > { %p834_p8 = scmp.lt.s32.totalorder %s832_s24, %s827_s16 }
  0x1a   : > { %p830_p4 = pnand %p829_p3, %p828_p2 }
  0x1b   : > { %p835_p10 = por %p834_p8, %p833_p5 }
  0x1c   : > { %p831_p7 = pneg %p830_p4 }
  0x1e   : > { %p836_p9 = pnand %p835_p10, %p831_p7 }
  0x20   : > { %839 = shalt.err (!%p836_p9)
}
  0x21   : > { %s923_s30 = smov 128   ;;  %s924_s6 = smov 8  }
  0x22   : > { %748 = dma.hbm_to_vmem [thread:$0]  (!%p1022_p13), %s174_s10, 1024, %s176_s12, %s164_s14, %s923_s30, %s923_s30, %s924_s6  }
  0x23   : > { %p184_p2 = pnand %p685_p0, %p183_p1 }
  0x24   : > { %s1043_s7 = sand.u32 (!%p184_p2), 1, %s913_s18  }
  0x25   : > { %187 = sbr.rel (%p184_p2) target bundleno = 993 (0x3e1), region = 36  ;;  %s686_s8 = sshll.u32 (!%p184_p2), %s1043_s7, 6 }
  0x26   : > { %s190_s9 = scalar_lea.sflag (!%p184_p2), [#allocation4], %s1043_s7  ;;  %s193_s11 = scalar_lea.vmem (!%p184_p2), [#allocation3], %s686_s8 }
  0x2a   : > { %900 = dma.done.wait (%p1000_p6), %s190_s9, 1024  }
  0x2b   : > { %902 = vsyncadd (%p1000_p6), %s190_s9, 4294966272  ;;  %v737_v0 = vld [vmem:[%s1186_s1 + $0x18] sm:$0xff]  ;;  %v736_v1 = vld [vmem:[%s1186_s1 + $0x10] sm:$0xff]  ;;  %vm264_vm0 = vcmask 523264   ;;  %s925_s27 = smov 120   ;;  %vm320_vm1 = vcmask 64512  }
  0x2c   : > { %281 = vmatpush.bf16.msra.mxu0 %v737_v0  ;;  %v735_v2 = vld [vmem:[%s1186_s1 + $0x8] sm:$0xff]  ;;  %v734_v3 = vld [vmem:[%s1186_s1] sm:$0xff]  ;;  %v1072_v7 = vld [vmem:[%s193_s11 + $0x10] sm:$0xff]  ;;  %vm365_vm2 = vcmask 130048   ;;  %s926_s24 = smov 112   ;;  %vm522_vm3 = vcmask 261120  }
  0x2d   : > { %v1065_v4 = vld [vmem:[%s193_s11] sm:$0xff]  ;;  %v1067_v5 = vld [vmem:[%s193_s11 + $0x8] sm:$0xff]  ;;  %v1074_v8 = vld [vmem:[%s193_s11 + $0x18] sm:$0xff]  ;;  %s564_s9 = sld [smem:[#allocation2]] }
  0x2e   : > { %v228_v6 = vpack.c.bf16 %v1067_v5, %v1065_v4  ;;  %v229_v9 = vpack.c.bf16 %v1074_v8, %v1072_v7  ;;  %v1079_v10 = vld [vmem:[%s193_s11 + $0x20] sm:$0xff]  ;;  %v1081_v11 = vld [vmem:[%s193_s11 + $0x28] sm:$0xff]  ;;  %v1086_v13 = vld [vmem:[%s193_s11 + $0x30] sm:$0xff] }
  0x2f   : > { %v230_v12 = vpack.c.bf16 %v1081_v11, %v1079_v10  ;;  %v1088_v14 = vld [vmem:[%s193_s11 + $0x38] sm:$0xff]  ;;  %s1126_s11 = scalar_lea.vmem [#allocation6], %s686_s8  ;;  %s740_s8 = sshll.u32 %s978_s3, 6 }
  0x30   : > { %282 = vmatpush.bf16.msra.mxu0 %v736_v1  ;;  %v231_v15 = vpack.c.bf16 %v1088_v14, %v1086_v13  ;;  %s602_s13 = scalar_lea.hbm %s1189_s4, %s740_s8  ;;  %s603_s14 = sshll.u32 %s1126_s11, 4  ;;  %s604_s14 = int_to_ptr.vmem [resolvable:$true] %s603_s14 }
  0x31   : > { %s605_s15 = sshll.u32 %s602_s13, 4  ;;  %s591_s3 = scalar_lea.sflag [#allocation5], %s1043_s7  ;;  %s606_s15 = int_to_ptr.hbm [resolvable:$true] %s605_s15 }
  0x32   : > { %s869_s16 = sshra.s32 %s606_s15, 4  ;;  %s870_s16 = int_to_ptr.hbm [resolvable:$true] %s869_s16 }
  0x33   : > { %s871_s21 = scalar_lea.hbm %s870_s16, 64  ;;  %p876_p0 = scmp.lt.s32.totalorder %s870_s16, %s1189_s4 }
  0x34   : > { %283 = vmatpush.bf16.msra.mxu0 %v735_v2  ;;  %p872_p6 = scmp.ne.s32.totalorder %s870_s16, %s871_s21 }
  0x36   : > { %p873_p9 = pnand %p872_p6, %p1007_p11 }
  0x38   : > { %284 = vmatpush.bf16.msra.mxu0 %v734_v3  ;;  %p874_p13 = pneg %p873_p9 }
  0x3b   : > { %704 = vmatmul.msk.bf16.vlgmr.msra.gmra.mxu0 %vm264_vm0, %v228_v6 }
  0x4b   : > { %705 = vmatmul.msk.bf16.gmra.mxu0 %vm264_vm0, %v229_v9 }
  0x5b   : > { %706 = vmatmul.msk.bf16.gmra.mxu0 %vm264_vm0, %v230_v12 }
  0x6b   : > { %707 = vmatmul.msk.bf16.gmra.mxu0 %vm264_vm0, %v231_v15 }
  0xb8   : > { %v286_v16 = vpop.f32.mrf.mxu0 }
  0xc0   : > { %v288_v17 = vpop.f32.mrf.mxu0 }
  0xc1   : > { %v306_v18 = vpack.c.bf16 %v288_v17, %v286_v16 }
  0xc8   : > { %v291_v19 = vpop.f32.mrf.mxu0 }
  0xc9   : > { %v310_v28 = vmax.f32 %v286_v16, %v291_v19 }
  0xd0   : > { %v293_v20 = vpop.f32.mrf.mxu0 }
  0xd1   : > { %v307_v21 = vpack.c.bf16 %v293_v20, %v291_v19  ;;  %v311_v29 = vmax.f32 %v288_v17, %v293_v20 }
  0xd8   : > { %v296_v22 = vpop.f32.mrf.mxu0 }
  0xe0   : > { %v298_v23 = vpop.f32.mrf.mxu0 }
  0xe1   : > { %v308_v24 = vpack.c.bf16 %v298_v23, %v296_v22 }
  0xe8   : > { %v301_v25 = vpop.f32.mrf.mxu0 }
  0xe9   : > { %v312_v26 = vmax.f32 %v296_v22, %v301_v25 }
  0xeb   : > { %v314_v33 = vmax.f32 %v310_v28, %v312_v26 }
  0xf0   : > { %v303_v27 = vpop.f32.mrf.mxu0 }
  0xf1   : > { %v309_v30 = vpack.c.bf16 %v303_v27, %v301_v25  ;;  %v313_v31 = vmax.f32 %v298_v23, %v303_v27 }
  0xf3   : > { %v315_v32 = vmax.f32 %v311_v29, %v313_v31 }
  0xf5   : > { %v316_v34 = vpack.c.bf16 %v315_v32, %v314_v33 }
  0xf7   : > { %318 = vrot.lane.b32.xlu0 %v316_v34, %s925_s27 }
 0x169   : > { %v319_v35 = vpop.permute.xlu0 %318 }
 0x16a   : > { %v334_v36 = vsel %vm320_vm1, %v319_v35, 0 }
 0x16b   : > { %343 = vmatpush.bf16.xpose.msra.mxu1 %v334_v36 }
 0x172   : > { %708 = vmatmul.msk.bf16.vlgmr.msra.gmra.mxu1 %vm320_vm1, %v306_v18 }
 0x182   : > { %709 = vmatmul.msk.bf16.gmra.mxu1 %vm320_vm1, %v307_v21 }
 0x192   : > { %710 = vmatmul.msk.bf16.gmra.mxu1 %vm320_vm1, %v308_v24 }
 0x1a2   : > { %711 = vmatmul.msk.bf16.gmra.mxu1 %vm320_vm1, %v309_v30 }
 0x1ef   : > { %v345_v37 = vpop.f32.mrf.mxu1 }
 0x1f0   : > { %v366_v38 = vsel %vm365_vm2, %v345_v37, -inf }
 0x1f1   : > { %367 = vmax.xlane.f32.xlu0 %v366_v38 }
 0x1f7   : > { %v347_v39 = vpop.f32.mrf.mxu1 }
 0x1f8   : > { %v369_v40 = vsel %vm365_vm2, %v347_v39, -inf }
 0x1f9   : > { %370 = vmax.xlane.f32.xlu1 %v369_v40 }
 0x1ff   : > { %v350_v41 = vpop.f32.mrf.mxu1 }
 0x200   : > { %v372_v42 = vsel %vm365_vm2, %v350_v41, -inf }
 0x201   : > { %373 = vmax.xlane.f32.xlu2 %v372_v42  ;;  %v739_v42 = vld [vmem:[%s1187_s2 + $0x8] sm:$0xff] }
 0x202   : > { %541 = vmatpush.bf16.msra.mxu3 %v739_v42 }
 0x207   : > { %v352_v43 = vpop.f32.mrf.mxu1 }
 0x208   : > { %v375_v44 = vsel %vm365_vm2, %v352_v43, -inf }
 0x209   : > { %376 = vmax.xlane.f32.xlu2 %v375_v44 }
 0x20f   : > { %v355_v45 = vpop.f32.mrf.mxu1 }
 0x210   : > { %v378_v46 = vsel %vm365_vm2, %v355_v45, -inf }
 0x211   : > { %379 = vmax.xlane.f32.xlu2 %v378_v46 }
 0x212   : > { %450 = vrot.lane.b32.xlu1 %v316_v34, %s926_s24  ;;  %s875_s24 = scalar_lea.hbm %s1189_s4, 128 }
 0x213   : > { %p877_p1 = scmp.lt.s32.totalorder %s875_s24, %s871_s21 }
 0x215   : > { %p878_p3 = por %p877_p1, %p876_p0 }
 0x217   : > { %v357_v47 = vpop.f32.mrf.mxu1  ;;  %p879_p4 = pnand %p878_p3, %p874_p13 }
 0x218   : > { %v381_v48 = vsel %vm365_vm2, %v357_v47, -inf }
 0x219   : > { %382 = vmax.xlane.f32.xlu2 %v381_v48 }
 0x21f   : > { %v360_v49 = vpop.f32.mrf.mxu1 }
 0x220   : > { %v384_v50 = vsel %vm365_vm2, %v360_v49, -inf }
 0x221   : > { %385 = vmax.xlane.f32.xlu2 %v384_v50 }
 0x227   : > { %v362_v51 = vpop.f32.mrf.mxu1 }
 0x228   : > { %v387_v52 = vsel %vm365_vm2, %v362_v51, -inf }
 0x23c   : > { %388 = vmax.xlane.f32.xlu1 %v387_v52 }
 0x264   : > { %v368_v53 = vpop.xlane.xlu0 %367 }
 0x265   : > { %v390_v54 = vsub.f32 %v345_v37, %v368_v53 }
 0x267   : > { %v398_v55 = vmul.f32 1.442695, %v390_v54 }
 0x269   : > { %793 = vpow2.f32 %v398_v55 }
 0x26c   : > { %v371_v56 = vpop.xlane.xlu1 %370 }
 0x26d   : > { %v391_v57 = vsub.f32 %v347_v39, %v371_v56 }
 0x26f   : > { %v794_v58 = vpop.eup %793  ;;  %v400_v59 = vmul.f32 1.442695, %v391_v57 }
 0x270   : > { %v414_v60 = vsel %vm365_vm2, %v794_v58, 0.0 }
 0x271   : > { %795 = vpow2.f32 %v400_v59  ;;  %415 = vadd.xlane.f32.xlu2 %v414_v60 }
 0x274   : > { %v374_v61 = vpop.xlane.xlu2 %373 }
 0x275   : > { %v392_v62 = vsub.f32 %v350_v41, %v374_v61 }
 0x277   : > { %v796_v63 = vpop.eup %795  ;;  %v402_v0 = vmul.f32 1.442695, %v392_v62 }
 0x278   : > { %v417_v1 = vsel %vm365_vm2, %v796_v63, 0.0  ;;  %v446_v18 = vpack.c.bf16 %v796_v63, %v794_v58 }
 0x279   : > { %797 = vpow2.f32 %v402_v0  ;;  %418 = vadd.xlane.f32.xlu2 %v417_v1 }
 0x27c   : > { %v377_v2 = vpop.xlane.xlu2 %376 }
 0x27d   : > { %v393_v3 = vsub.f32 %v352_v43, %v377_v2  ;;  %v738_v43 = vld [vmem:[%s1187_s2] sm:$0xff] }
 0x27e   : > { %542 = vmatpush.bf16.msra.mxu3 %v738_v43 }
 0x27f   : > { %v798_v6 = vpop.eup %797  ;;  %v404_v9 = vmul.f32 1.442695, %v393_v3 }
 0x280   : > { %v420_v12 = vsel %vm365_vm2, %v798_v6, 0.0 }
 0x281   : > { %799 = vpow2.f32 %v404_v9  ;;  %421 = vadd.xlane.f32.xlu0 %v420_v12 }
 0x284   : > { %v451_v15 = vpop.permute.xlu1 %450  ;;  %v380_v16 = vpop.xlane.xlu2 %379 }
 0x285   : > { %v394_v17 = vsub.f32 %v355_v45, %v380_v16  ;;  %472 = vmatpush.bf16.msra.mxu2 %v451_v15 }
 0x287   : > { %v800_v19 = vpop.eup %799  ;;  %v406_v20 = vmul.f32 1.442695, %v394_v17 }
 0x288   : > { %712 = vmatmul.msk.bf16.vlgmr.msra.gmra.mxu2 %vm365_vm2, %v446_v18  ;;  %v423_v21 = vsel %vm365_vm2, %v800_v19, 0.0  ;;  %v447_v29 = vpack.c.bf16 %v800_v19, %v798_v6 }
 0x289   : > { %801 = vpow2.f32 %v406_v20  ;;  %424 = vadd.xlane.f32.xlu2 %v423_v21 }
 0x28c   : > { %v383_v22 = vpop.xlane.xlu2 %382 }
 0x28d   : > { %v395_v23 = vsub.f32 %v357_v47, %v383_v22 }
 0x28f   : > { %v802_v24 = vpop.eup %801  ;;  %v408_v25 = vmul.f32 1.442695, %v395_v23 }
 0x290   : > { %v426_v26 = vsel %vm365_vm2, %v802_v24, 0.0 }
 0x291   : > { %803 = vpow2.f32 %v408_v25  ;;  %427 = vadd.xlane.f32.xlu0 %v426_v26 }
 0x294   : > { %v386_v27 = vpop.xlane.xlu2 %385 }
 0x295   : > { %v396_v28 = vsub.f32 %v360_v49, %v386_v27 }
 0x297   : > { %v804_v30 = vpop.eup %803  ;;  %v410_v31 = vmul.f32 1.442695, %v396_v28 }
 0x298   : > { %713 = vmatmul.msk.bf16.gmra.mxu2 %vm365_vm2, %v447_v29  ;;  %v429_v32 = vsel %vm365_vm2, %v804_v30, 0.0  ;;  %v448_v35 = vpack.c.bf16 %v804_v30, %v802_v24  ;;  %v565_v24 = vstv %s564_s9 }
 0x299   : > { %805 = vpow2.f32 %v410_v31  ;;  %430 = vadd.xlane.f32.xlu2 %v429_v32 }
 0x29f   : > { %v806_v33 = vpop.eup %805 }
 0x2a0   : > { %v432_v34 = vsel %vm365_vm2, %v806_v33, 0.0 }
 0x2a1   : > { %433 = vadd.xlane.f32.xlu0 %v432_v34 }
 0x2a8   : > { %714 = vmatmul.msk.bf16.gmra.mxu2 %vm365_vm2, %v448_v35 }
 0x2af   : > { %v389_v36 = vpop.xlane.xlu1 %388 }
 0x2b0   : > { %v397_v37 = vsub.f32 %v362_v51, %v389_v36 }
 0x2b2   : > { %v412_v38 = vmul.f32 1.442695, %v397_v37 }
 0x2b4   : > { %807 = vpow2.f32 %v412_v38 }
 0x2ba   : > { %v808_v39 = vpop.eup %807 }
 0x2bb   : > { %v435_v40 = vsel %vm365_vm2, %v808_v39, 0.0  ;;  %v449_v41 = vpack.c.bf16 %v808_v39, %v806_v33 }
 0x2bc   : > { %436 = vadd.xlane.f32.xlu2 %v435_v40 }
 0x2bd   : > { %715 = vmatmul.msk.bf16.gmra.mxu2 %vm365_vm2, %v449_v41 }
 0x2e4   : > { %v416_v44 = vpop.xlane.xlu2 %415 }
 0x2e5   : > { %809 = vrcp.f32 %v416_v44 }
 0x2eb   : > { %v810_v47 = vpop.eup %809 }
 0x2ec   : > { %v419_v45 = vpop.xlane.xlu2 %418 }
 0x2ed   : > { %811 = vrcp.f32 %v419_v45 }
 0x2f3   : > { %v812_v48 = vpop.eup %811 }
 0x2f4   : > { %v422_v53 = vpop.xlane.xlu0 %421 }
 0x2f5   : > { %813 = vrcp.f32 %v422_v53 }
 0x2fb   : > { %v814_v56 = vpop.eup %813 }
 0x2fc   : > { %v425_v54 = vpop.xlane.xlu2 %424 }
 0x2fd   : > { %815 = vrcp.f32 %v425_v54 }
 0x303   : > { %v816_v57 = vpop.eup %815 }
 0x304   : > { %v428_v62 = vpop.xlane.xlu0 %427 }
 0x305   : > { %817 = vrcp.f32 %v428_v62 }
 0x30b   : > { %v474_v46 = vpop.f32.mrf.mxu2  ;;  %v818_v1 = vpop.eup %817 }
 0x30c   : > { %v494_v50 = vmul.f32 %v810_v47, %v474_v46  ;;  %v431_v63 = vpop.xlane.xlu2 %430 }
 0x30d   : > { %819 = vrcp.f32 %v431_v63 }
 0x313   : > { %v476_v49 = vpop.f32.mrf.mxu2  ;;  %v820_v2 = vpop.eup %819 }
 0x314   : > { %v495_v51 = vmul.f32 %v812_v48, %v476_v49  ;;  %v434_v15 = vpop.xlane.xlu0 %433 }
 0x315   : > { %821 = vrcp.f32 %v434_v15 }
 0x316   : > { %v502_v52 = vpack.c.bf16 %v495_v51, %v494_v50 }
 0x318   : > { %724 = vmatmul.msk.bf16.vlgmr.msra.gmra.mxu3 %vm522_vm3, %v502_v52 }
 0x31b   : > { %v479_v55 = vpop.f32.mrf.mxu2  ;;  %v822_v18 = vpop.eup %821 }
 0x31c   : > { %v496_v59 = vmul.f32 %v814_v56, %v479_v55 }
 0x323   : > { %v481_v58 = vpop.f32.mrf.mxu2 }
 0x324   : > { %v497_v60 = vmul.f32 %v816_v57, %v481_v58 }
 0x326   : > { %v503_v61 = vpack.c.bf16 %v497_v60, %v496_v59 }
 0x328   : > { %725 = vmatmul.msk.bf16.gmra.mxu3 %vm522_vm3, %v503_v61 }
 0x32b   : > { %v484_v0 = vpop.f32.mrf.mxu2 }
 0x32c   : > { %v498_v6 = vmul.f32 %v818_v1, %v484_v0 }
 0x32f   : > { %v437_v16 = vpop.xlane.xlu2 %436 }
 0x330   : > { %823 = vrcp.f32 %v437_v16 }
 0x333   : > { %v486_v3 = vpop.f32.mrf.mxu2 }
 0x334   : > { %v499_v9 = vmul.f32 %v820_v2, %v486_v3 }
 0x336   : > { %v504_v12 = vpack.c.bf16 %v499_v9, %v498_v6  ;;  %v824_v19 = vpop.eup %823 }
 0x338   : > { %726 = vmatmul.msk.bf16.gmra.mxu3 %vm522_vm3, %v504_v12 }
 0x340   : > { %v489_v17 = vpop.f32.mrf.mxu2 }
 0x341   : > { %v500_v21 = vmul.f32 %v822_v18, %v489_v17 }
 0x348   : > { %v491_v20 = vpop.f32.mrf.mxu2 }
 0x349   : > { %v501_v22 = vmul.f32 %v824_v19, %v491_v20 }
 0x34b   : > { %v505_v23 = vpack.c.bf16 %v501_v22, %v500_v21 }
 0x34d   : > { %727 = vmatmul.msk.bf16.gmra.mxu3 %vm522_vm3, %v505_v23 }
 0x39b   : > { %v544_v25 = vpop.f32.mrf.mxu3 }
 0x39c   : > { %v566_v26 = vmul.f32 %v565_v24, %v544_v25 }
 0x39e   : > { %v574_v27 = vadd.f32 %v566_v26, %v1065_v4 }
 0x3a0   : > { %582 = vst.msk [vmem:[%s1126_s11] sm:$0xff] %vm264_vm0, %v574_v27 }
 0x3a3   : > { %v546_v28 = vpop.f32.mrf.mxu3 }
 0x3a4   : > { %v567_v29 = vmul.f32 %v565_v24, %v546_v28 }
 0x3a6   : > { %v575_v30 = vadd.f32 %v567_v29, %v1067_v5 }
 0x3a8   : > { %583 = vst.msk [vmem:[%s1126_s11 + $0x8] sm:$0xff] %vm264_vm0, %v575_v30 }
 0x3ab   : > { %v549_v31 = vpop.f32.mrf.mxu3 }
 0x3ac   : > { %v568_v32 = vmul.f32 %v565_v24, %v549_v31 }
 0x3ae   : > { %v576_v4 = vadd.f32 %v568_v32, %v1072_v7 }
 0x3b0   : > { %584 = vst.msk [vmem:[%s1126_s11 + $0x10] sm:$0xff] %vm264_vm0, %v576_v4 }
 0x3b3   : > { %v551_v33 = vpop.f32.mrf.mxu3 }
 0x3b4   : > { %v569_v34 = vmul.f32 %v565_v24, %v551_v33 }
 0x3b6   : > { %v577_v35 = vadd.f32 %v569_v34, %v1074_v8 }
 0x3b8   : > { %585 = vst.msk [vmem:[%s1126_s11 + $0x18] sm:$0xff] %vm264_vm0, %v577_v35 }
 0x3bb   : > { %v554_v36 = vpop.f32.mrf.mxu3 }
 0x3bc   : > { %v570_v5 = vmul.f32 %v565_v24, %v554_v36 }
 0x3be   : > { %v578_v37 = vadd.f32 %v570_v5, %v1079_v10 }
 0x3c0   : > { %586 = vst.msk [vmem:[%s1126_s11 + $0x20] sm:$0xff] %vm264_vm0, %v578_v37 }
 0x3c3   : > { %v556_v38 = vpop.f32.mrf.mxu3 }
 0x3c4   : > { %v571_v39 = vmul.f32 %v565_v24, %v556_v38 }
 0x3c6   : > { %v579_v7 = vadd.f32 %v571_v39, %v1081_v11 }
 0x3c8   : > { %587 = vst.msk [vmem:[%s1126_s11 + $0x28] sm:$0xff] %vm264_vm0, %v579_v7 }
 0x3d0   : > { %v559_v40 = vpop.f32.mrf.mxu3 }
 0x3d1   : > { %v572_v41 = vmul.f32 %v565_v24, %v559_v40 }
 0x3d3   : > { %v580_v8 = vadd.f32 %v572_v41, %v1086_v13 }
 0x3d5   : > { %588 = vst.msk [vmem:[%s1126_s11 + $0x30] sm:$0xff] %vm264_vm0, %v580_v8 }
 0x3d8   : > { %v561_v10 = vpop.f32.mrf.mxu3 }
 0x3d9   : > { %v573_v42 = vmul.f32 %v565_v24, %v561_v10 }
 0x3db   : > { %v581_v11 = vadd.f32 %v573_v42, %v1088_v14 }
 0x3dd   : > { %589 = vst.msk [vmem:[%s1126_s11 + $0x38] sm:$0xff] %vm264_vm0, %v581_v11 }
 0x3de   : > { %882 = shalt.err (!%p879_p4)
}
 0x3df   : > { %s927_s7 = smov 128   ;;  %s928_s30 = smov 8  }
 0x3e0   : > { %743 = dma.vmem_to_hbm [thread:$0]  (%p1007_p11), %s604_s14, 1024, %s606_s15, %s591_s3, %s927_s7, %s927_s7, %s928_s30  }
 0x3e1 PF: > { %s620_s6 = sand.u32 1, %s909_s17   ;;  %p1195_p7 = scmp.ge.s32.totalorder %s921_s20, 2 }
 0x3e2   : > { %s621_s9 = scalar_lea.sflag [#allocation5], %s620_s6 }
 0x3e3   : > { %p750_p5 = pnand %p1195_p7, %p1011_p12 }
 0x3e5   : > { %p751_p8 = pneg %p750_p5 }
 0x3e7   : > { %904 = dma.done.wait (%p751_p8), %s621_s9, 1024  }
 0x3e8   : > { %906 = vsyncadd (%p751_p8), %s621_s9, 4294966272  ;;  %p18_p10 = scmp.ge.s32.totalorder %s982_s22, 4   ;;  %s1196_s17 = smov %s913_s18 }
 0x3e9   : > { %s1197_s18 = smov %s917_s19  ;;  %s1198_s19 = smov %s994_s25 }
 0x3ea   : > { %s1199_s20 = smov %s982_s22  ;;  %20 = sbr.rel (!%p18_p10) target bundleno = 7 (0x7), region = 81 }
 0x3ef   :  { %627 = vsyncpa [#allocation4], 1 }
 0x3f0   :  { %629 = vsyncpa [#allocation4 + $0x1], 1 }
 0x3f1   :  { %630 = vsyncpa [#allocation5], 1 }
 0x3f2   :  { %632 = vsyncpa [#allocation5 + $0x1], 1 }

</bundles_post_ra>
